<compile_context>
chip_gen: v6e
topology: v6e:2x2x1
jax: 0.10.0
libtpu: 0.0.40
codegen_flags: <defaults>
</compile_context>

<pallas_src>
import functools

import jax
import jax.numpy as jnp
from jax.experimental import pallas as pl
from jax.experimental.pallas import tpu as pltpu


def _round_up(x, m):
    return (x + m - 1) // m * m


def _mlp_kernel(x_ref, w1_ref, b1_ref, w2_ref, b2_ref, o_ref):
    # Fused Linear -> ReLU -> Linear on one (bb, obs) activation tile.
    # f32 MXU accumulation; bias add + ReLU in f32 regardless of operand dtype.
    h = jnp.dot(x_ref[...], w1_ref[...], preferred_element_type=jnp.float32)
    h = jnp.maximum(h + b1_ref[...], 0.0)
    out = jnp.dot(h.astype(w2_ref.dtype), w2_ref[...],
                  preferred_element_type=jnp.float32)
    o_ref[...] = (out + b2_ref[...]).astype(o_ref.dtype)


def _choose_batch_blocking(B, sublane, max_block_rows):
    """Pick (block_rows, n_blocks) covering B rows.

    - block_rows is a multiple of the dtype sublane pack (8 f32 / 16 bf16).
    - At most `max_block_rows` rows per block (VMEM headroom is >100x anyway).
    - For moderate/large batches the block count is even so the two v7x
      TensorCores split a "parallel" grid evenly; tiny batches use one block
      (no wasted grid-step overhead on single-TC v5e/v6e).
    """
    B_sub = _round_up(B, sublane)
    max_bb = max(sublane, (max_block_rows // sublane) * sublane)
    n = pl.cdiv(B_sub, max_bb)
    if n == 1 and B_sub >= 256:
        n = 2                      # let v7x's two TCs each take half the batch
    if n > 1 and n % 2:
        n += 1                     # even block count -> balanced megacore split
    bb = _round_up(pl.cdiv(B_sub, n), sublane)
    n = pl.cdiv(B, bb)             # grid steps actually needed to cover B
    return bb, n


@functools.partial(jax.jit, static_argnames=("max_block_rows", "compute_dtype"))
def net_forward(x, w1, b1, w2, b2, *, max_block_rows=4096, compute_dtype=None):
    """x: (B, obs), w1: (obs, H), b1: (H,), w2: (H, A), b2: (A,) -> (B, A).

    Weights are stored transposed vs. PyTorch nn.Linear so the kernel computes
    plain x @ W + b.
    """
    orig_dtype = x.dtype
    B, obs = x.shape
    H = w1.shape[1]
    A = w2.shape[1]

    # Optional bf16 operands (bandwidth win: x stream halves). Accumulation,
    # bias add and ReLU stay f32; default path is pure f32.
    if compute_dtype is not None:
        x = x.astype(compute_dtype)
        w1 = w1.astype(compute_dtype)
        w2 = w2.astype(compute_dtype)
    b1 = b1.astype(jnp.float32).reshape(1, H)
    b2 = b2.astype(jnp.float32).reshape(1, A)

    # Dtype-aware sublane pack: 8 rows for 4-byte, 16 for 2-byte, 32 for 1-byte.
    itemsize = jnp.dtype(x.dtype).itemsize
    sublane = 8 * max(1, 4 // itemsize)

    bb, n_blocks = _choose_batch_blocking(B, sublane, max_block_rows)

    nbytes = lambda a: a.size * a.dtype.itemsize
    cost = pl.CostEstimate(
        flops=2 * B * (obs * H + H * A),
        transcendentals=0,
        bytes_accessed=(nbytes(x) + nbytes(w1) + nbytes(b1)
                        + nbytes(w2) + nbytes(b2)
                        + B * A * jnp.dtype(orig_dtype).itemsize),
    )

    out = pl.pallas_call(
        _mlp_kernel,
        out_shape=jax.ShapeDtypeStruct((B, A), orig_dtype),
        grid=(n_blocks,),
        in_specs=[
            # Activations: blocked along the batch axis only; the feature dim
            # stays at its logical size (full-extent last block dim), so no
            # padded copies of x are ever created or DMA'd.
            pl.BlockSpec((bb, obs), lambda i: (i, 0)),
            # Weights/biases: full-array blocks with constant index_maps so
            # they stay resident in VMEM across every grid step.
            pl.BlockSpec((obs, H), lambda i: (0, 0)),
            pl.BlockSpec((1, H), lambda i: (0, 0)),
            pl.BlockSpec((H, A), lambda i: (0, 0)),
            pl.BlockSpec((1, A), lambda i: (0, 0)),
        ],
        # Logical (B, A) output: only A columns hit HBM; out-of-bounds rows of
        # the (possibly partial) last block are masked on writeback.
        out_specs=pl.BlockSpec((bb, A), lambda i: (i, 0)),
        compiler_params=pltpu.CompilerParams(
            # Batch blocks are independent: "parallel" lets v7x's two
            # TensorCores split the grid; harmless on v5e/v6e (1 TC).
            dimension_semantics=("parallel",),
        ),
        cost_estimate=cost,
    )(x, w1, b1, w2, b2)

    return out


def init_params(key, obs_size, hidden_size, n_actions, dtype=jnp.float32):
    """Deterministic init mimicking PyTorch nn.Linear (uniform +-1/sqrt(fan_in))."""
    k1, k2, k3, k4 = jax.random.split(key, 4)
    lim1 = 1.0 / jnp.sqrt(obs_size)
    lim2 = 1.0 / jnp.sqrt(hidden_size)
    w1 = jax.random.uniform(k1, (obs_size, hidden_size), dtype, -lim1, lim1)
    b1 = jax.random.uniform(k2, (hidden_size,), dtype, -lim1, lim1)
    w2 = jax.random.uniform(k3, (hidden_size, n_actions), dtype, -lim2, lim2)
    b2 = jax.random.uniform(k4, (n_actions,), dtype, -lim2, lim2)
    return w1, b1, w2, b2


def _ref_forward(x, w1, b1, w2, b2):
    return jnp.maximum(x @ w1 + b1, 0.0) @ w2 + b2


if __name__ == "__main__":
    obs_size, hidden_size, n_actions = 32, 64, 16

    key = jax.random.PRNGKey(0)
    kx, kp, kx2 = jax.random.split(key, 3)
    w1, b1, w2, b2 = init_params(kp, obs_size, hidden_size, n_actions)

    # Small batch (matches the original toy config): single grid step.
    x_small = jax.random.normal(kx, (8, obs_size), jnp.float32)
    out_small = jax.block_until_ready(net_forward(x_small, w1, b1, w2, b2))
    ref_small = _ref_forward(x_small, w1, b1, w2, b2)
    assert out_small.shape == (8, n_actions)
    assert jnp.allclose(out_small, ref_small, atol=1e-5, rtol=1e-5)

    # Larger, non-multiple batch: exercises the even two-block split
    # (bb=152, grid=(2,)) with a masked partial last block — no batch padding.
    x_big = jax.random.normal(kx2, (300, obs_size), jnp.float32)
    out_big = jax.block_until_ready(net_forward(x_big, w1, b1, w2, b2))
    ref_big = _ref_forward(x_big, w1, b1, w2, b2)
    assert out_big.shape == (300, n_actions)
    assert jnp.allclose(out_big, ref_big, atol=1e-5, rtol=1e-5)

    # bf16 operand path (bandwidth win on v5e/v6e); f32 accumulation + f32
    # bias/ReLU; 16-row sublane rounding. Not the default (precision).
    out_bf16 = jax.block_until_ready(
        net_forward(x_big, w1, b1, w2, b2, compute_dtype=jnp.bfloat16))
    assert out_bf16.shape == (300, n_actions)
    assert jnp.allclose(out_bf16, ref_big, atol=1e-1, rtol=1e-1)

    print("KERNEL_OK")
</pallas_src>

<mosaic_0001>
module attributes {stable_mosaic.version = 11 : i64} {
  func.func @_mlp_kernel(%arg0: i32, %arg1: memref<8x32xf32, #tpu.memory_space<vmem>>, %arg2: memref<32x64xf32, #tpu.memory_space<vmem>>, %arg3: memref<1x64xf32, #tpu.memory_space<vmem>>, %arg4: memref<64x16xf32, #tpu.memory_space<vmem>>, %arg5: memref<1x16xf32, #tpu.memory_space<vmem>>, %arg6: memref<8x16xf32, #tpu.memory_space<vmem>>) attributes {dimension_semantics = [#tpu.dimension_semantics<parallel>], iteration_bounds = array<i64: 1>, scalar_prefetch = 0 : i64, scratch_operands = 0 : i64, tpu.core_type = #tpu.core_type<tc>, window_params = [{transform_indices = @transform_0, window_bounds = array<i64: 8, 32>}, {pipeline_mode = #tpu.pipeline_mode<synchronous>, transform_indices = @transform_1, window_bounds = array<i64: 32, 64>}, {pipeline_mode = #tpu.pipeline_mode<synchronous>, transform_indices = @transform_2, window_bounds = array<i64: 1, 64>}, {pipeline_mode = #tpu.pipeline_mode<synchronous>, transform_indices = @transform_3, window_bounds = array<i64: 64, 16>}, {pipeline_mode = #tpu.pipeline_mode<synchronous>, transform_indices = @transform_4, window_bounds = array<i64: 1, 16>}, {transform_indices = @transform_5, window_bounds = array<i64: 8, 16>}]} {
    %c0 = arith.constant 0 : index
    %c0_0 = arith.constant 0 : index
    %0 = vector.load %arg1[%c0, %c0_0] : memref<8x32xf32, #tpu.memory_space<vmem>>, vector<8x32xf32>
    %c0_1 = arith.constant 0 : index
    %c0_2 = arith.constant 0 : index
    %1 = vector.load %arg2[%c0_1, %c0_2] : memref<32x64xf32, #tpu.memory_space<vmem>>, vector<32x64xf32>
    %cst = arith.constant dense<0.000000e+00> : vector<8x64xf32>
    %2 = tpu.matmul %0, %1, %cst {dimension_numbers = #tpu.dot_dimension_numbers<[1], [0], [0], [1], [0, 0, 1, 1], [], []>} : vector<8x32xf32>, vector<32x64xf32>, vector<8x64xf32> -> vector<8x64xf32>
    %c0_3 = arith.constant 0 : index
    %c0_4 = arith.constant 0 : index
    %3 = vector.load %arg3[%c0_3, %c0_4] : memref<1x64xf32, #tpu.memory_space<vmem>>, vector<1x64xf32>
    %4 = vector.broadcast %3 : vector<1x64xf32> to vector<8x64xf32>
    %5 = arith.addf %2, %4 : vector<8x64xf32>
    %cst_5 = arith.constant 0.000000e+00 : f32
    %6 = vector.broadcast %cst_5 : f32 to vector<8x64xf32>
    %7 = arith.maximumf %5, %6 : vector<8x64xf32>
    %c0_6 = arith.constant 0 : index
    %c0_7 = arith.constant 0 : index
    %8 = vector.load %arg4[%c0_6, %c0_7] : memref<64x16xf32, #tpu.memory_space<vmem>>, vector<64x16xf32>
    %cst_8 = arith.constant dense<0.000000e+00> : vector<8x16xf32>
    %9 = tpu.matmul %7, %8, %cst_8 {dimension_numbers = #tpu.dot_dimension_numbers<[1], [0], [0], [1], [0, 0, 1, 1], [], []>} : vector<8x64xf32>, vector<64x16xf32>, vector<8x16xf32> -> vector<8x16xf32>
    %c0_9 = arith.constant 0 : index
    %c0_10 = arith.constant 0 : index
    %10 = vector.load %arg5[%c0_9, %c0_10] : memref<1x16xf32, #tpu.memory_space<vmem>>, vector<1x16xf32>
    %11 = vector.broadcast %10 : vector<1x16xf32> to vector<8x16xf32>
    %12 = arith.addf %9, %11 : vector<8x16xf32>
    %c0_11 = arith.constant 0 : index
    %c0_12 = arith.constant 0 : index
    %13 = vector.load %arg6[%c0_11, %c0_12] : memref<8x16xf32, #tpu.memory_space<vmem>>, vector<8x16xf32>
    tpu.vector_store %arg6[%c0_11, %c0_12], %12 {strides = array<i32>} : memref<8x16xf32, #tpu.memory_space<vmem>>, vector<8x16xf32>,
    return
  }
  func.func @transform_0(%arg0: i32) -> (i32, i32) {
    %c0_i32 = arith.constant 0 : i32
    %c0_i32_0 = arith.constant 0 : i32
    return %arg0, %c0_i32 : i32, i32
  }
  func.func @transform_1(%arg0: i32) -> (i32, i32) {
    %c0_i32 = arith.constant 0 : i32
    %c0_i32_0 = arith.constant 0 : i32
    %c0_i32_1 = arith.constant 0 : i32
    return %c0_i32, %c0_i32_0 : i32, i32
  }
  func.func @transform_2(%arg0: i32) -> (i32, i32) {
    %c0_i32 = arith.constant 0 : i32
    %c0_i32_0 = arith.constant 0 : i32
    %c0_i32_1 = arith.constant 0 : i32
    return %c0_i32, %c0_i32_0 : i32, i32
  }
  func.func @transform_3(%arg0: i32) -> (i32, i32) {
    %c0_i32 = arith.constant 0 : i32
    %c0_i32_0 = arith.constant 0 : i32
    %c0_i32_1 = arith.constant 0 : i32
    return %c0_i32, %c0_i32_0 : i32, i32
  }
  func.func @transform_4(%arg0: i32) -> (i32, i32) {
    %c0_i32 = arith.constant 0 : i32
    %c0_i32_0 = arith.constant 0 : i32
    %c0_i32_1 = arith.constant 0 : i32
    return %c0_i32, %c0_i32_0 : i32, i32
  }
  func.func @transform_5(%arg0: i32) -> (i32, i32) {
    %c0_i32 = arith.constant 0 : i32
    %c0_i32_0 = arith.constant 0 : i32
    return %arg0, %c0_i32 : i32, i32
  }
}

</mosaic_0001>

<bundles_post_ra>
// kernel: net_forward.1
= control target key start
LH: loop header
LB: loop body
LE: loop exit
PB: predicated region body
PF: predicated region fallthrough
CT: control target
= control target key end

     0   :  { %v286_v1 = vmov 0.0   ;;  %vm287_vm0 = vmmov 0   ;;  %s369_s0 = inlined_call_operand.vmem [shape: f32[8,32], index: 0, kind: input, shape index: {}]   ;;  %s370_s1 = inlined_call_operand.vmem [shape: f32[32,64], index: 1, kind: input, shape index: {}]   ;;  %s371_s2 = inlined_call_operand.vmem [shape: f32[1,64], index: 2, kind: input, shape index: {}]   ;;  %s372_s3 = inlined_call_operand.vmem [shape: f32[64,16], index: 3, kind: input, shape index: {}]   ;;  %s373_s4 = inlined_call_operand.vmem [shape: f32[1,16], index: 4, kind: input, shape index: {}]   ;;  %s374_s5 = inlined_call_operand.hbm [shape: f32[8,16], index: 5, kind: output, shape index: {}]  }
   0x1   :  { %v25_v0 = vld [vmem:[%s370_s1 + $0x18] sm:$0xff]  ;;  %231 = vmatprep.subr.mxu0 %v286_v1  ;;  %v24_v2 = vld [vmem:[%s370_s1 + $0x10] sm:$0xff]  ;;  %239 = vmatprep.mubr.msk.f32.mxu0 %vm287_vm0, %v286_v1  ;;  %v23_v5 = vld [vmem:[%s370_s1 + $0x8] sm:$0xff] }
   0x2   :  { %v115_v3 = vld [vmem:[%s372_s3 + $0x38] sm:$0xff]  ;;  %232 = vmatpush3.msra.mxu0 %v25_v0  ;;  %242 = vmatprep.subr.mxu1 %v286_v1  ;;  %v114_v4 = vld [vmem:[%s372_s3 + $0x30] sm:$0xff] }
   0x3   :  { %233 = vmatprep.subr.mxu0 %v286_v1  ;;  %243 = vmatpush3.msra.mxu1 %v115_v3 }
   0x4   :  { %10 = vsyncpa [#allocation3], 0  ;;  %234 = vmatpush3.msra.mxu0 %v24_v2  ;;  %244 = vmatprep.subr.mxu1 %v286_v1  ;;  %v113_v6 = vld [vmem:[%s372_s3 + $0x28] sm:$0xff]  ;;  %v22_v7 = vld [vmem:[%s370_s1] sm:$0xff]  ;;  %vm33_vm1 = vcmask 261120   ;;  %vm123_vm2 = vcmask 523264  }
   0x5   :  { %235 = vmatprep.subr.mxu0 %v286_v1  ;;  %245 = vmatpush3.msra.mxu1 %v114_v4  ;;  %v21_v8 = vld [vmem:[%s369_s0] sm:$0xff]  ;;  %v111_v10 = vld [vmem:[%s372_s3 + $0x18] sm:$0xff]  ;;  %v110_v11 = vld [vmem:[%s372_s3 + $0x10] sm:$0xff]  ;;  %s288_s21 = smov [#allocation2]   ;;  %vm197_vm3 = vcmask 130048  }
   0x6   :  { %236 = vmatpush3.msra.mxu0 %v23_v5  ;;  %246 = vmatprep.subr.mxu1 %v286_v1  ;;  %v112_v9 = vld [vmem:[%s372_s3 + $0x20] sm:$0xff]  ;;  %v109_v12 = vld [vmem:[%s372_s3 + $0x8] sm:$0xff]  ;;  %s205_s22 = sshll.u32 %s288_s21, 4  ;;  %s206_s22 = int_to_ptr.vmem [resolvable:$true] %s205_s22 }
   0x7   :  { %237 = vmatprep.subr.mxu0 %v286_v1  ;;  %247 = vmatpush3.msra.mxu1 %v113_v6  ;;  %v108_v13 = vld [vmem:[%s372_s3] sm:$0xff]  ;;  %s264_s3 = scalar_lea.vmem %s206_s22, 128  ;;  %p269_p1 = scmp.lt.s32.totalorder %s206_s22, %s206_s22 }
   0x8   :  { %238 = vmatpush3.msra.mxu0 %v22_v7  ;;  %248 = vmatprep.subr.mxu1 %v286_v1  ;;  %v213_v14 = vld [vmem:[%s371_s2] ss:$0 sm:$0xff]  ;;  %p265_p0 = scmp.ne.s32.totalorder %s206_s22, %s264_s3  ;;  %p270_p2 = scmp.lt.s32.totalorder %s264_s3, %s264_s3 }
   0x9   :  { %240 = vmatmul.mubr.msk.f32.vlgmr.msra.gmra.mxu0 %vm33_vm1, %v21_v8  ;;  %249 = vmatpush3.msra.mxu1 %v112_v9  ;;  %v215_v19 = vld [vmem:[%s373_s4] ss:$0 sm:$0xff] }
   0xa   :  { %250 = vmatprep.subr.mxu1 %v286_v1  ;;  %258 = vmatprep.mubr.msk.f32.mxu1 %vm287_vm0, %v286_v1  ;;  %p271_p3 = por %p270_p2, %p269_p1 }
   0xb   :  { %251 = vmatpush3.msra.mxu1 %v111_v10 }
   0xc   :  { %252 = vmatprep.subr.mxu1 %v286_v1  ;;  %p272_p4 = pnand %p271_p3, %p265_p0 }
   0xd   :  { %253 = vmatpush3.msra.mxu1 %v110_v11 }
   0xe   :  { %254 = vmatprep.subr.mxu1 %v286_v1 }
   0xf   :  { %255 = vmatpush3.msra.mxu1 %v109_v12 }
  0x10   :  { %256 = vmatprep.subr.mxu1 %v286_v1 }
  0x11   :  { %257 = vmatpush3.msra.mxu1 %v108_v13 }
  0xc9   :  { %v103_v15 = vpop.f32.mrf.mxu0 }
  0xca   :  { %v104_v16 = vadd.f32 %v213_v14, %v103_v15 }
  0xcb   :  { %v241_v17 = vpop.f32.mrf.mxu0 }
  0xcc   :  { %v107_v18 = vmax.f32 %v104_v16, 0.0 }
  0xce   :  { %259 = vmatmul.mubr.msk.f32.vlgmr.msra.gmra.mxu1 %vm123_vm2, %v107_v18 }
 0x18e   :  { %v193_v20 = vpop.f32.mrf.mxu1 }
 0x18f   :  { %v194_v21 = vadd.f32 %v215_v19, %v193_v20 }
 0x190   :  { %v260_v22 = vpop.f32.mrf.mxu1 }
 0x191   :  { %198 = vst.msk [vmem:[#allocation2] sm:$0xff] %vm197_vm3, %v194_v21 }
 0x192   :  { %275 = shalt.err (!%p272_p4)
}
 0x193   :  { %208 = dma.vmem_to_hbm [thread:$0]  %s206_s22, 128, %s374_s5, [#allocation3]  }
 0x194   :  { %284 = dma.done.wait [#allocation3], 128  }
 0x195   :  { %285 = vsyncadd [#allocation3], 4294967168 }
 0x196   :  { %212 = vsyncpa [#allocation3], 1 }

</bundles_post_ra>
